<compile_context>
chip_gen: v7x
topology: tpu7x:2x2x1
jax: 0.10.0
libtpu: 0.0.40
codegen_flags: <defaults>
</compile_context>

<pallas_src>
import jax
import jax.numpy as jnp
from jax.experimental import pallas as pl
from jax.experimental.pallas import tpu as pltpu


def _mlp_proj_kernel(x_ref, w_ref, b_ref, o_ref):
    """One (batch b, token-tile i) grid step.

    x_ref: (C, tm)   channel-major activation tile (straight from NCHW layout)
    w_ref: (E, C)    nn.Linear weight layout, resident across the whole grid
    b_ref: (1, E)    bias, resident
    o_ref: (tm, E)   token-major output tile -> final (B, N, E) layout
    """
    # Fused token transpose: (C, tm) -> (tm, C) on the XLU (ample slack in an
    # HBM-bound kernel), then cast to bf16 for the MXU.
    tokens = x_ref[...].T.astype(jnp.bfloat16)                # (tm, C)
    w = w_ref[...].astype(jnp.bfloat16)                       # (E, C)
    # (tm, C) x (E, C) contracted over C  ==  x @ W^T ; accumulate in f32 on the MXU.
    acc = jax.lax.dot_general(
        tokens, w,
        dimension_numbers=(((1,), (1,)), ((), ())),
        preferred_element_type=jnp.float32,
    )                                                         # (tm, E) f32
    # Bias add in f32, downcast only at the final store.
    o_ref[...] = (acc + b_ref[...]).astype(o_ref.dtype)


def _choose_token_tile(n_tokens, in_dim, embed_dim, vmem_budget_bytes):
    """Largest multiple-of-128 token tile whose double-buffered working set fits the
    VMEM budget (sized conservatively for v7x's 64 MiB physical VMEM)."""
    if n_tokens <= 128:
        return int(n_tokens)                  # full-dim block, no 128 constraint
    itemsize = 4                              # f32 HBM residents
    fixed = 2 * embed_dim * in_dim * itemsize + 2 * embed_dim * itemsize   # W + b
    per_token = 2 * (in_dim + embed_dim) * itemsize           # x-in + out, 2x buffered
    tm = max(128, (vmem_budget_bytes - fixed) // per_token)
    tm = min(tm, 2048)                        # ~85%+ of HBM roofline by tile 512-1024
    tm = (tm // 128) * 128
    tm = min(tm, pl.cdiv(n_tokens, 128) * 128)                # don't exceed padded N
    return int(tm)


# Above v6e (32 MiB) / v5e (16 MiB) scoped defaults, comfortably under v7x's 64 MiB.
_VMEM_LIMIT_BYTES = 48 * 1024 * 1024
_VMEM_TILE_BUDGET = 40 * 1024 * 1024


def mlp_proj(x_bcn, weight, bias, *, tm=None):
    """x_bcn: (B, C, N) channel-major activations, weight: (E, C), bias: (E,)
    returns (B, N, E)  ==  x_bcn.transpose(0, 2, 1) @ weight.T + bias
    """
    B, C, N = x_bcn.shape
    E = weight.shape[0]
    if tm is None:
        tm = _choose_token_tile(N, C, E, _VMEM_TILE_BUDGET)
    # grid = (batch, token tiles); pl.cdiv + Pallas boundary padding means there is no
    # divisibility requirement on B*H*W (out-of-bounds output rows are discarded, and
    # out-of-bounds input columns only feed those discarded rows).
    grid = (B, pl.cdiv(N, tm))
    bias2d = bias.reshape(1, E)

    flops = 2 * B * N * C * E
    bytes_accessed = 4 * (B * C * N + E * C + E + B * N * E)

    return pl.pallas_call(
        _mlp_proj_kernel,
        out_shape=jax.ShapeDtypeStruct((B, N, E), x_bcn.dtype),
        grid_spec=pltpu.PrefetchScalarGridSpec(
            num_scalar_prefetch=0,
            grid=grid,
            in_specs=[
                # (None, C, tm): batch dim squeezed; kernel sees a (C, tm) tile.
                pl.BlockSpec((None, C, tm), lambda b, i: (b, 0, i)),
                # Constant block index -> weight/bias DMA'd once and stay resident.
                pl.BlockSpec((E, C), lambda b, i: (0, 0)),
                pl.BlockSpec((1, E), lambda b, i: (0, 0)),
            ],
            # Natural (tm, E) token-major output tile; with E a multiple of 128 (the
            # realistic SegFormer configs) this is a lane-dense, unmasked store path.
            out_specs=pl.BlockSpec((None, tm, E), lambda b, i: (b, i, 0)),
        ),
        compiler_params=pltpu.CompilerParams(
            # Both axes parallel -> grid shards across v7x's 2 TensorCores.
            dimension_semantics=("parallel", "parallel"),
            vmem_limit_bytes=_VMEM_LIMIT_BYTES,
        ),
        cost_estimate=pl.CostEstimate(
            flops=flops, transcendentals=0, bytes_accessed=bytes_accessed),
    )(x_bcn, weight, bias2d)


def mlp_forward(x, weight, bias):
    """Pallas port of MLP.forward:  x.flatten(2).transpose(1, 2) @ W.T + b

    x:      (B, C, H, W)  NCHW, f32 (or bf16 — kernel casts for the MXU either way)
    weight: (E, C)        nn.Linear layout (out_features, in_features), used as-is
    bias:   (E,)
    returns (B, H*W, E)
    """
    B, C, H, W = x.shape
    # Row-major reshape only (no data movement); the token transpose happens in-kernel.
    return mlp_proj(x.reshape(B, C, H * W), weight, bias)


if __name__ == "__main__":
    # Small shapes consistent with the module (input_dim=C, embed_dim=E are ctor args).
    # E=128 keeps the output store lane-dense, matching real SegFormer embed dims
    # (256/768) which are multiples of 128.
    B, C, H, W = 2, 32, 16, 16
    E = 128

    key = jax.random.PRNGKey(0)
    kx, kw, kb = jax.random.split(key, 3)

    x = jax.random.normal(kx, (B, C, H, W), dtype=jnp.float32)
    # Deterministic nn.Linear-style init: U(-1/sqrt(C), 1/sqrt(C))
    bound = 1.0 / (C ** 0.5)
    weight = jax.random.uniform(kw, (E, C), minval=-bound, maxval=bound, dtype=jnp.float32)
    bias = jax.random.uniform(kb, (E,), minval=-bound, maxval=bound, dtype=jnp.float32)

    fwd = jax.jit(mlp_forward)
    out = jax.block_until_ready(fwd(x, weight, bias))

    # Reference in plain JAX (f32). The kernel runs the matmul in bf16 on the MXU
    # with f32 accumulation, so use a bf16-appropriate tolerance.
    tokens_ref = jnp.transpose(x.reshape(B, C, H * W), (0, 2, 1))
    ref = jnp.einsum("bnc,ec->bne", tokens_ref, weight) + bias
    assert out.shape == (B, H * W, E)
    assert jnp.allclose(out, ref, atol=5e-2, rtol=5e-2), float(jnp.max(jnp.abs(out - ref)))

    print("KERNEL_OK")
</pallas_src>

<mosaic_0001>
module attributes {stable_mosaic.version = 11 : i64} {
  func.func @_mlp_proj_kernel(%arg0: i32, %arg1: i32, %arg2: memref<1x32x256xf32, #tpu.memory_space<vmem>>, %arg3: memref<128x32xf32, #tpu.memory_space<vmem>>, %arg4: memref<1x128xf32, #tpu.memory_space<vmem>>, %arg5: memref<1x256x128xf32, #tpu.memory_space<vmem>>) attributes {dimension_semantics = [#tpu.dimension_semantics<parallel>, #tpu.dimension_semantics<parallel>], iteration_bounds = array<i64: 2, 1>, scalar_prefetch = 0 : i64, scratch_operands = 0 : i64, tpu.core_type = #tpu.core_type<tc>, window_params = [{transform_indices = @transform_0, window_bounds = array<i64: 1, 32, 256>}, {pipeline_mode = #tpu.pipeline_mode<synchronous>, transform_indices = @transform_1, window_bounds = array<i64: 128, 32>}, {pipeline_mode = #tpu.pipeline_mode<synchronous>, transform_indices = @transform_2, window_bounds = array<i64: 1, 128>}, {transform_indices = @transform_3, window_bounds = array<i64: 1, 256, 128>}]} {
    %c0 = arith.constant 0 : index
    %c0_0 = arith.constant 0 : index
    %c0_1 = arith.constant 0 : index
    %0 = vector.load %arg2[%c0, %c0_0, %c0_1] : memref<1x32x256xf32, #tpu.memory_space<vmem>>, vector<1x32x256xf32>
    %1 = vector.shape_cast %0 : vector<1x32x256xf32> to vector<32x256xf32>
    %2 = tpu.transpose %1, [1, 0] : vector<32x256xf32> -> vector<256x32xf32>
    %3 = arith.truncf %2 : vector<256x32xf32> to vector<256x32xbf16>
    %c0_2 = arith.constant 0 : index
    %c0_3 = arith.constant 0 : index
    %4 = vector.load %arg3[%c0_2, %c0_3] : memref<128x32xf32, #tpu.memory_space<vmem>>, vector<128x32xf32>
    %5 = arith.truncf %4 : vector<128x32xf32> to vector<128x32xbf16>
    %cst = arith.constant dense<0.000000e+00> : vector<256x128xf32>
    %6 = tpu.matmul %3, %5, %cst {dimension_numbers = #tpu.dot_dimension_numbers<[1], [1], [0], [0], [0, 0, 1, 0], [], []>} : vector<256x32xbf16>, vector<128x32xbf16>, vector<256x128xf32> -> vector<256x128xf32>
    %c0_4 = arith.constant 0 : index
    %c0_5 = arith.constant 0 : index
    %7 = vector.load %arg4[%c0_4, %c0_5] : memref<1x128xf32, #tpu.memory_space<vmem>>, vector<1x128xf32>
    %8 = vector.broadcast %7 : vector<1x128xf32> to vector<256x128xf32>
    %9 = arith.addf %6, %8 : vector<256x128xf32>
    %c0_6 = arith.constant 0 : index
    %c0_7 = arith.constant 0 : index
    %c0_8 = arith.constant 0 : index
    %10 = vector.load %arg5[%c0_6, %c0_7, %c0_8] : memref<1x256x128xf32, #tpu.memory_space<vmem>>, vector<1x256x128xf32>
    %11 = vector.shape_cast %10 : vector<1x256x128xf32> to vector<256x128xf32>
    %12 = vector.shape_cast %9 : vector<256x128xf32> to vector<1x256x128xf32>
    tpu.vector_store %arg5[%c0_6, %c0_7, %c0_8], %12 {strides = array<i32>} : memref<1x256x128xf32, #tpu.memory_space<vmem>>, vector<1x256x128xf32>,
    return
  }
  func.func @transform_0(%arg0: i32, %arg1: i32) -> (i32, i32, i32) {
    %c0_i32 = arith.constant 0 : i32
    %c0_i32_0 = arith.constant 0 : i32
    return %arg0, %c0_i32, %arg1 : i32, i32, i32
  }
  func.func @transform_1(%arg0: i32, %arg1: i32) -> (i32, i32) {
    %c0_i32 = arith.constant 0 : i32
    %c0_i32_0 = arith.constant 0 : i32
    %c0_i32_1 = arith.constant 0 : i32
    return %c0_i32, %c0_i32_0 : i32, i32
  }
  func.func @transform_2(%arg0: i32, %arg1: i32) -> (i32, i32) {
    %c0_i32 = arith.constant 0 : i32
    %c0_i32_0 = arith.constant 0 : i32
    %c0_i32_1 = arith.constant 0 : i32
    return %c0_i32, %c0_i32_0 : i32, i32
  }
  func.func @transform_3(%arg0: i32, %arg1: i32) -> (i32, i32, i32) {
    %c0_i32 = arith.constant 0 : i32
    %c0_i32_0 = arith.constant 0 : i32
    return %arg0, %arg1, %c0_i32 : i32, i32, i32
  }
}

</mosaic_0001>

<bundles_post_ra>
// kernel: mlp_forward.1
= control target key start
LH: loop header
LB: loop body
LE: loop exit
PB: predicated region body
PF: predicated region fallthrough
CT: control target
= control target key end

     0   :  { %8 = vsyncpa [#allocation3], 0  ;;  %s1345_s0 = inlined_call_operand.vmem [shape: f32[2,32,256], index: 0, kind: input, shape index: {}]   ;;  %s1346_s1 = inlined_call_operand.vmem [shape: f32[128,32], index: 1, kind: input, shape index: {}]   ;;  %s1347_s2 = inlined_call_operand.vmem [shape: f32[1,128], index: 2, kind: input, shape index: {}]   ;;  %s1348_s3 = inlined_call_operand.hbm [shape: f32[2,256,128], index: 3, kind: output, shape index: {}]  }
   0x1   :  { %10 = vsyncpa [#allocation3 + $0x1], 0  ;;  %s1066_s12 = smov 0   ;;  %s1068_s13 = smov 0  }
   0x2   :  { %s1070_s14 = smov 0   ;;  %s1072_s15 = smov 0  }
   0x3   :  { %s1074_s16 = smov 0   ;;  %s1076_s17 = smov 0  }
   0x4 LB: > { %s681_s18 = sadd.s32 4294967295, %s1041_s17   ;;  %s682_s19 = sadd.s32 4294967294, %s1041_s17   ;;  %s1041_s17 = sphi %s1076_s17, %s16_s17   ;;  %s1037_s16 = sphi %s1074_s16, %s1355_s16   ;;  %s1033_s15 = sphi %s1072_s15, %s1354_s15   ;;  %s1029_s14 = sphi %s1070_s14, %s1353_s14   ;;  %s1025_s13 = sphi %s1068_s13, %s1352_s13   ;;  %s1021_s12 = sphi %s1066_s12, %s1351_s12  }
   0x5   : > { %s28_s20 = sadd.s32 1, %s1037_s16  ;;  %s107_s21 = sadd.s32 1, %s1029_s14 }
   0x6   : > { %p30_p0 = scmp.ge.s32.totalorder %s28_s20, 2  ;;  %p117_p1 = scmp.ne.s32.totalorder %s1029_s14, %s1025_s13 }
   0x7   : > { %p118_p2 = scmp.eq.s32.totalorder %s681_s18, 1  ;;  %p123_p3 = scmp.ne.s32.totalorder %s1025_s13, %s1021_s12 }
   0x8   : > { %s1357_s20 = smov (%p30_p0, %s28_s20), 0  ;;  %p124_p5 = scmp.eq.s32.totalorder %s682_s19, 1 }
   0x9   : > { %p1106_p4 = por %p118_p2, %p117_p1  ;;  %s102_s23 = ssub.s32 %s1037_s16, %s1357_s20 }
   0xa   : > { %p685_p6 = scmp.ge.s32.totalorder %s1041_s17, 1  ;;  %p105_p7 = scmp.eq.s32.totalorder %s102_s23, 0 }
   0xb   : > { %p1113_p8 = por %p124_p5, %p123_p3  ;;  %p161_p9 = scmp.lt.s32.totalorder %s1041_s17, 3 }
   0xc   : > { %s1119_s25 = scalar_select %p105_p7, %s1029_s14, %s107_s21  }
   0xd   : > { %p162_p10 = pnand %p685_p6, %p161_p9 }
   0xe   : > { %p190_p11 = scmp.lt.s32.totalorder (!%p162_p10), %s1033_s15, 1  ;;  %v289_v0 = vld [vmem:[%s1346_s1] sm:$0xff] (!%p162_p10)  ;;  %v290_v1 = vld [vmem:[%s1346_s1 + $0x8] sm:$0xff] (!%p162_p10)  ;;  %vm320_vm0 = vcmask (!%p162_p10), 261120   ;;  %v291_v2 = vld [vmem:[%s1346_s1 + $0x10] sm:$0xff] (!%p162_p10)  ;;  %s186_s29 = sand.u32 (!%p162_p10), 1, %s1025_s13  }
   0xf   : > { %165 = sbr.rel (%p162_p10) target bundleno = 454 (0x1c6), region = 32  ;;  %v305_v3 = vpack.c.bf16 (!%p162_p10), %v290_v1, %v289_v0  ;;  %v292_v4 = vld [vmem:[%s1346_s1 + $0x18] sm:$0xff] (!%p162_p10)  ;;  %v293_v7 = vld [vmem:[%s1346_s1 + $0x20] sm:$0xff] (!%p162_p10)  ;;  %v294_v8 = vld [vmem:[%s1346_s1 + $0x28] sm:$0xff] (!%p162_p10)  ;;  %s686_s30 = sshll.u32 (!%p162_p10), %s186_s29, 8 }
  0x10   : > { %v306_v5 = vpack.c.bf16 (!%p162_p10), %v292_v4, %v291_v2  ;;  %v307_v16 = vpack.c.bf16 (!%p162_p10), %v294_v8, %v293_v7  ;;  %v295_v20 = vld [vmem:[%s1346_s1 + $0x30] sm:$0xff] (!%p162_p10)  ;;  %v296_v23 = vld [vmem:[%s1346_s1 + $0x38] sm:$0xff] (!%p162_p10)  ;;  %v297_v27 = vld [vmem:[%s1346_s1 + $0x40] sm:$0xff] (!%p162_p10)  ;;  %s1226_s6 = scalar_lea.vmem (!%p162_p10), [#allocation2], %s686_s30  ;;  %s1043_s19 = smov (!%p162_p10), [#allocation2]  }
  0x11   : > { %801 = vmatprep.subr.msk.bf16.mxu0 (!%p162_p10), %vm320_vm0, %v305_v3  ;;  %802 = vmatprep.subr.msk.bf16.mxu1 (!%p162_p10), %vm320_vm0, %v305_v3  ;;  %v370_v6 = vsel (!%p162_p10), %vm320_vm0, %v305_v3, 0  ;;  %v308_v26 = vpack.c.bf16 (!%p162_p10), %v296_v23, %v295_v20  ;;  %v298_v28 = vld [vmem:[%s1346_s1 + $0x48] sm:$0xff] (!%p162_p10)  ;;  %v299_v31 = vld [vmem:[%s1346_s1 + $0x50] sm:$0xff] (!%p162_p10)  ;;  %v300_v32 = vld [vmem:[%s1346_s1 + $0x58] sm:$0xff] (!%p162_p10)  ;;  %s967_s21 = sshll.u32 (!%p162_p10), %s1043_s19, 4  ;;  %s968_s21 = int_to_ptr.vmem [resolvable:$false] %s967_s21 }
  0x12   : > { %738 = vmatpush3.bf16.xpose.msra.mxu0 (!%p162_p10), %v370_v6  ;;  %793 = vmatpush3.bf16.xpose.msra.mxu1 (!%p162_p10), %v370_v6  ;;  %v373_v15 = vsel (!%p162_p10), %vm320_vm0, %v306_v5, 0  ;;  %v376_v25 = vsel (!%p162_p10), %vm320_vm0, %v307_v16, 0  ;;  %v309_v30 = vpack.c.bf16 (!%p162_p10), %v298_v28, %v297_v27  ;;  %v310_v34 = vpack.c.bf16 (!%p162_p10), %v300_v32, %v299_v31  ;;  %v301_v35 = vld [vmem:[%s1346_s1 + $0x60] sm:$0xff] (!%p162_p10)  ;;  %v302_v36 = vld [vmem:[%s1346_s1 + $0x68] sm:$0xff] (!%p162_p10)  ;;  %v303_v39 = vld [vmem:[%s1346_s1 + $0x70] sm:$0xff] (!%p162_p10)  ;;  %s969_s23 = scalar_lea.vmem (!%p162_p10), %s968_s21, 8192 }
  0x13   : > { %803 = vmatprep.subr.msk.bf16.mxu0 (!%p162_p10), %vm320_vm0, %v306_v5  ;;  %804 = vmatprep.subr.msk.bf16.mxu1 (!%p162_p10), %vm320_vm0, %v306_v5  ;;  %v379_v29 = vsel (!%p162_p10), %vm320_vm0, %v308_v26, 0  ;;  %v311_v38 = vpack.c.bf16 (!%p162_p10), %v302_v36, %v301_v35  ;;  %v304_v40 = vld [vmem:[%s1346_s1 + $0x78] sm:$0xff] (!%p162_p10) }
  0x14   : > { %v382_v33 = vsel (!%p162_p10), %vm320_vm0, %v309_v30, 0  ;;  %v385_v37 = vsel (!%p162_p10), %vm320_vm0, %v310_v34, 0  ;;  %v312_v42 = vpack.c.bf16 (!%p162_p10), %v304_v40, %v303_v39 }
  0x15   : > { %v388_v41 = vsel (!%p162_p10), %vm320_vm0, %v311_v38, 0 }
  0x16   : > { %s191_s7 = scalar_select %p190_p11, %s1033_s15, 1  ;;  %v391_v43 = vsel %vm320_vm0, %v312_v42, 0 }
  0x18   : > { %s711_s8 = sshll.u32 %s191_s7, 6  ;;  %s712_s7 = sshll.u32 %s1033_s15, 12 }
  0x19   : > { %s197_s11 = scalar_lea.vmem %s1345_s0, %s711_s8  ;;  %s602_s8 = sshll.u32 %s1226_s6, 4  ;;  %s1287_s8 = int_to_ptr.vmem [resolvable:$true] %s602_s8 }
  0x1a   : > { %v201_v9 = vld [vmem:[%s197_s11] sm:$0xff]  ;;  %v202_v10 = vld [vmem:[%s197_s11 + $0x8] sm:$0xff]  ;;  %v203_v11 = vld [vmem:[%s197_s11 + $0x10] sm:$0xff]  ;;  %740 = vmatpush3.bf16.xpose.msra.mxu0 %v373_v15  ;;  %794 = vmatpush3.bf16.xpose.msra.mxu1 %v373_v15  ;;  %s1285_s10 = scalar_lea.hbm %s1348_s3, %s712_s7  ;;  %s963_s18 = scalar_lea.vmem %s1287_s8, 4096 }
  0x1b   : > { %v875_v12 = vpack.i.bf16 %v202_v10, %v201_v9  ;;  %v204_v13 = vld [vmem:[%s197_s11 + $0x18] sm:$0xff]  ;;  %v205_v17 = vld [vmem:[%s197_s11 + $0x20] sm:$0xff]  ;;  %v206_v18 = vld [vmem:[%s197_s11 + $0x28] sm:$0xff]  ;;  %805 = vmatprep.subr.msk.bf16.mxu0 %vm320_vm0, %v307_v16  ;;  %806 = vmatprep.subr.msk.bf16.mxu1 %vm320_vm0, %v307_v16  ;;  %p964_p12 = scmp.ne.s32.totalorder %s1287_s8, %s963_s18  ;;  %p970_p1 = scmp.lt.s32.totalorder %s1287_s8, %s968_s21 }
  0x1c   : > { %v877_v14 = vpack.i.bf16 %v204_v13, %v203_v11  ;;  %v879_v19 = vpack.i.bf16 %v206_v18, %v205_v17  ;;  %v207_v21 = vld [vmem:[%s197_s11 + $0x30] sm:$0xff]  ;;  %v208_v22 = vld [vmem:[%s197_s11 + $0x38] sm:$0xff]  ;;  %s1299_s11 = scalar_lea.sflag [#allocation3], %s186_s29  ;;  %p971_p2 = scmp.lt.s32.totalorder %s969_s23, %s963_s18 }
  0x1d   : > { %876 = vxpose.xlu0.b32.start [1/4] (short) %v875_v12, 128  ;;  %v881_v24 = vpack.i.bf16 %v208_v22, %v207_v21  ;;  %p965_p13 = pnand %p964_p12, %p1106_p4 }
  0x1e   : > { %p972_p3 = por %p971_p2, %p970_p1 }
  0x1f   : > { %p966_p0 = pneg %p965_p13 }
  0x21   : > { %878 = vxpose.xlu0.b32.cont [2/4] (short) %v877_v14, 128  ;;  %p973_p5 = pnand %p972_p3, %p966_p0 }
  0x22   : > { %742 = vmatpush3.bf16.xpose.msra.mxu0 %v376_v25  ;;  %795 = vmatpush3.bf16.xpose.msra.mxu1 %v376_v25 }
  0x23   : > { %807 = vmatprep.subr.msk.bf16.mxu0 %vm320_vm0, %v308_v26  ;;  %808 = vmatprep.subr.msk.bf16.mxu1 %vm320_vm0, %v308_v26 }
  0x25   : > { %880 = vxpose.xlu0.b32.cont [3/4] (short) %v879_v19, 128 }
  0x29   : > { %882 = vxpose.xlu0.b32.end [4/4] (short) %v881_v24, 128 }
  0x2a   : > { %744 = vmatpush3.bf16.xpose.msra.mxu0 %v379_v29  ;;  %796 = vmatpush3.bf16.xpose.msra.mxu1 %v379_v29 }
  0x2b   : > { %809 = vmatprep.subr.msk.bf16.mxu0 %vm320_vm0, %v309_v30  ;;  %810 = vmatprep.subr.msk.bf16.mxu1 %vm320_vm0, %v309_v30 }
  0x32   : > { %746 = vmatpush3.bf16.xpose.msra.mxu0 %v382_v33  ;;  %797 = vmatpush3.bf16.xpose.msra.mxu1 %v382_v33 }
  0x33   : > { %811 = vmatprep.subr.msk.bf16.mxu0 %vm320_vm0, %v310_v34  ;;  %812 = vmatprep.subr.msk.bf16.mxu1 %vm320_vm0, %v310_v34 }
  0x3a   : > { %748 = vmatpush3.bf16.xpose.msra.mxu0 %v385_v37  ;;  %798 = vmatpush3.bf16.xpose.msra.mxu1 %v385_v37 }
  0x3b   : > { %813 = vmatprep.subr.msk.bf16.mxu0 %vm320_vm0, %v311_v38  ;;  %814 = vmatprep.subr.msk.bf16.mxu1 %vm320_vm0, %v311_v38 }
  0x42   : > { %750 = vmatpush3.bf16.xpose.msra.mxu0 %v388_v41  ;;  %799 = vmatpush3.bf16.xpose.msra.mxu1 %v388_v41 }
  0x43   : > { %815 = vmatprep.subr.msk.bf16.mxu0 %vm320_vm0, %v312_v42  ;;  %816 = vmatprep.subr.msk.bf16.mxu1 %vm320_vm0, %v312_v42 }
  0x4a   : > { %752 = vmatpush3.bf16.xpose.msra.mxu0 %v391_v43  ;;  %800 = vmatpush3.bf16.xpose.msra.mxu1 %v391_v43 }
  0x9d   : > { %v883_v44 = vpop.trf.xlu0 }
  0x9e   : > { %v884_v46 = vunpack.i.l.bf16 %v883_v44  ;;  %v887_v47 = vunpack.i.h.bf16 %v883_v44  ;;  %v1220_v44 = vld [vmem:[%s1347_s2] ss:$0 sm:$0xff] }
  0xa1   : > { %v888_v45 = vpop.trf.xlu0 }
  0xa2   : > { %v889_v48 = vunpack.i.l.bf16 %v888_v45  ;;  %v892_v49 = vunpack.i.h.bf16 %v888_v45 }
  0xa4   : > { %v273_v50 = vpack.c.bf16 %v889_v48, %v884_v46  ;;  %v281_v51 = vpack.c.bf16 %v892_v49, %v887_v47 }
  0xa5   : > { %v893_v52 = vpop.trf.xlu0 }
  0xa6   : > { %753 = vmatprep.mubr.msk.bf16.mxu0 %vm320_vm0, %v273_v50  ;;  %769 = vmatprep.mubr.msk.bf16.mxu1 %vm320_vm0, %v281_v51  ;;  %v897_v53 = vunpack.i.h.bf16 %v893_v52  ;;  %v894_v54 = vunpack.i.l.bf16 %v893_v52 }
  0xa9   : > { %v898_v55 = vpop.trf.xlu0 }
  0xaa   : > { %v902_v56 = vunpack.i.h.bf16 %v898_v55  ;;  %v899_v57 = vunpack.i.l.bf16 %v898_v55 }
  0xac   : > { %v274_v58 = vpack.c.bf16 %v899_v57, %v894_v54  ;;  %v282_v59 = vpack.c.bf16 %v902_v56, %v897_v53 }
  0xad   : > { %v903_v60 = vpop.trf.xlu0 }
  0xae   : > { %754 = vmatmul.mubr.msk.bf16.vlgmr.msra.gmra.mrb[0].mxu0 %vm320_vm0, %v274_v58  ;;  %770 = vmatmul.mubr.msk.bf16.vlgmr.msra.gmra.mrb[0].mxu1 %vm320_vm0, %v282_v59  ;;  %v907_v61 = vunpack.i.h.bf16 %v903_v60  ;;  %v904_v62 = vunpack.i.l.bf16 %v903_v60 }
  0xb1   : > { %v908_v63 = vpop.trf.xlu0 }
  0xb2   : > { %v912_v0 = vunpack.i.h.bf16 %v908_v63  ;;  %v909_v1 = vunpack.i.l.bf16 %v908_v63 }
  0xb4   : > { %v275_v2 = vpack.c.bf16 %v909_v1, %v904_v62  ;;  %v283_v3 = vpack.c.bf16 %v912_v0, %v907_v61 }
  0xb5   : > { %v913_v4 = vpop.trf.xlu0 }
  0xb6   : > { %757 = vmatprep.mubr.msk.bf16.mxu0 %vm320_vm0, %v275_v2  ;;  %773 = vmatprep.mubr.msk.bf16.mxu1 %vm320_vm0, %v283_v3  ;;  %v917_v5 = vunpack.i.h.bf16 %v913_v4  ;;  %v914_v6 = vunpack.i.l.bf16 %v913_v4 }
  0xb9   : > { %v918_v7 = vpop.trf.xlu0 }
  0xba   : > { %v922_v8 = vunpack.i.h.bf16 %v918_v7  ;;  %v919_v9 = vunpack.i.l.bf16 %v918_v7 }
  0xbc   : > { %v276_v10 = vpack.c.bf16 %v919_v9, %v914_v6  ;;  %v284_v11 = vpack.c.bf16 %v922_v8, %v917_v5 }
  0xbd   : > { %v923_v12 = vpop.trf.xlu0 }
  0xbe   : > { %758 = vmatmul.mubr.msk.bf16.gmra.mrb[4].mxu0 %vm320_vm0, %v276_v10  ;;  %774 = vmatmul.mubr.msk.bf16.gmra.mrb[4].mxu1 %vm320_vm0, %v284_v11  ;;  %v927_v13 = vunpack.i.h.bf16 %v923_v12  ;;  %v924_v14 = vunpack.i.l.bf16 %v923_v12 }
  0xc1   : > { %v928_v15 = vpop.trf.xlu0 }
  0xc2   : > { %v932_v16 = vunpack.i.h.bf16 %v928_v15  ;;  %v929_v17 = vunpack.i.l.bf16 %v928_v15 }
  0xc4   : > { %v277_v18 = vpack.c.bf16 %v929_v17, %v924_v14  ;;  %v285_v19 = vpack.c.bf16 %v932_v16, %v927_v13 }
  0xc5   : > { %v933_v20 = vpop.trf.xlu0 }
  0xc6   : > { %761 = vmatprep.mubr.msk.bf16.mxu0 %vm320_vm0, %v277_v18  ;;  %777 = vmatprep.mubr.msk.bf16.mxu1 %vm320_vm0, %v285_v19  ;;  %v937_v21 = vunpack.i.h.bf16 %v933_v20  ;;  %v934_v22 = vunpack.i.l.bf16 %v933_v20 }
  0xc9   : > { %v938_v23 = vpop.trf.xlu0 }
  0xca   : > { %v942_v24 = vunpack.i.h.bf16 %v938_v23  ;;  %v939_v25 = vunpack.i.l.bf16 %v938_v23 }
  0xcc   : > { %v278_v26 = vpack.c.bf16 %v939_v25, %v934_v22  ;;  %v286_v27 = vpack.c.bf16 %v942_v24, %v937_v21 }
  0xcd   : > { %v943_v28 = vpop.trf.xlu0 }
  0xce   : > { %762 = vmatmul.mubr.msk.bf16.gmra.mrb[8].mxu0 %vm320_vm0, %v278_v26  ;;  %778 = vmatmul.mubr.msk.bf16.gmra.mrb[8].mxu1 %vm320_vm0, %v286_v27  ;;  %v947_v29 = vunpack.i.h.bf16 %v943_v28  ;;  %v944_v30 = vunpack.i.l.bf16 %v943_v28 }
  0xd1   : > { %v948_v31 = vpop.trf.xlu0 }
  0xd2   : > { %v952_v32 = vunpack.i.h.bf16 %v948_v31  ;;  %v949_v33 = vunpack.i.l.bf16 %v948_v31 }
  0xd4   : > { %v279_v34 = vpack.c.bf16 %v949_v33, %v944_v30  ;;  %v287_v35 = vpack.c.bf16 %v952_v32, %v947_v29 }
  0xd5   : > { %v953_v36 = vpop.trf.xlu0 }
  0xd6   : > { %765 = vmatprep.mubr.msk.bf16.mxu0 %vm320_vm0, %v279_v34  ;;  %781 = vmatprep.mubr.msk.bf16.mxu1 %vm320_vm0, %v287_v35  ;;  %v957_v37 = vunpack.i.h.bf16 %v953_v36  ;;  %v954_v38 = vunpack.i.l.bf16 %v953_v36 }
  0xd9   : > { %v958_v39 = vpop.trf.xlu0 }
  0xda   : > { %v962_v40 = vunpack.i.h.bf16 %v958_v39  ;;  %v959_v41 = vunpack.i.l.bf16 %v958_v39 }
  0xdc   : > { %v280_v42 = vpack.c.bf16 %v959_v41, %v954_v38  ;;  %v288_v43 = vpack.c.bf16 %v962_v40, %v957_v37 }
  0xde   : > { %766 = vmatmul.mubr.msk.bf16.gmra.mrb[12].mxu0 %vm320_vm0, %v280_v42  ;;  %782 = vmatmul.mubr.msk.bf16.gmra.mrb[12].mxu1 %vm320_vm0, %v288_v43 }
 0x181   : > { %v755_v45 = vpop.f32.mrb[0].mxu0  ;;  %v771_v46 = vpop.f32.mrb[0].mxu1 }
 0x182   : > { %v436_v47 = vadd.f32 %v755_v45, %v1220_v44  ;;  %v500_v48 = vadd.f32 %v771_v46, %v1220_v44  ;;  %v427_v49 = vpop.f32.mrb[1].mxu0  ;;  %v491_v50 = vpop.f32.mrb[1].mxu1 }
 0x183   : > { %v428_v51 = vadd.f32 %v1220_v44, %v427_v49  ;;  %v492_v52 = vadd.f32 %v1220_v44, %v491_v50  ;;  %v756_v53 = vpop.f32.mrb[2].mxu0  ;;  %v772_v54 = vpop.f32.mrb[2].mxu1 }
 0x184   : > { %556 = vst [vmem:[%s1226_s6 + $0x10] sm:$0xff] %v436_v47  ;;  %572 = vst [vmem:[%s1226_s6 + $0x90] sm:$0xff] %v500_v48  ;;  %v439_v55 = vadd.f32 %v756_v53, %v1220_v44  ;;  %v503_v56 = vadd.f32 %v772_v54, %v1220_v44  ;;  %v430_v57 = vpop.f32.mrb[3].mxu0  ;;  %v494_v58 = vpop.f32.mrb[3].mxu1 }
 0x185   : > { %554 = vst [vmem:[%s1226_s6] sm:$0xff] %v428_v51  ;;  %570 = vst [vmem:[%s1226_s6 + $0x80] sm:$0xff] %v492_v52  ;;  %v431_v59 = vadd.f32 %v1220_v44, %v430_v57  ;;  %v495_v60 = vadd.f32 %v1220_v44, %v494_v58 }
 0x186   : > { %557 = vst [vmem:[%s1226_s6 + $0x18] sm:$0xff] %v439_v55  ;;  %573 = vst [vmem:[%s1226_s6 + $0x98] sm:$0xff] %v503_v56 }
 0x187   : > { %555 = vst [vmem:[%s1226_s6 + $0x8] sm:$0xff] %v431_v59  ;;  %571 = vst [vmem:[%s1226_s6 + $0x88] sm:$0xff] %v495_v60 }
 0x191   : > { %v759_v61 = vpop.f32.mrb[4].mxu0  ;;  %v775_v62 = vpop.f32.mrb[4].mxu1 }
 0x192   : > { %v452_v63 = vadd.f32 %v759_v61, %v1220_v44  ;;  %v516_v0 = vadd.f32 %v775_v62, %v1220_v44  ;;  %v443_v1 = vpop.f32.mrb[5].mxu0  ;;  %v507_v2 = vpop.f32.mrb[5].mxu1 }
 0x193   : > { %v444_v3 = vadd.f32 %v1220_v44, %v443_v1  ;;  %v508_v4 = vadd.f32 %v1220_v44, %v507_v2  ;;  %v760_v5 = vpop.f32.mrb[6].mxu0  ;;  %v776_v6 = vpop.f32.mrb[6].mxu1 }
 0x194   : > { %560 = vst [vmem:[%s1226_s6 + $0x30] sm:$0xff] %v452_v63  ;;  %576 = vst [vmem:[%s1226_s6 + $0xb0] sm:$0xff] %v516_v0  ;;  %v455_v7 = vadd.f32 %v760_v5, %v1220_v44  ;;  %v519_v8 = vadd.f32 %v776_v6, %v1220_v44  ;;  %v446_v9 = vpop.f32.mrb[7].mxu0  ;;  %v510_v10 = vpop.f32.mrb[7].mxu1 }
 0x195   : > { %558 = vst [vmem:[%s1226_s6 + $0x20] sm:$0xff] %v444_v3  ;;  %574 = vst [vmem:[%s1226_s6 + $0xa0] sm:$0xff] %v508_v4  ;;  %v447_v11 = vadd.f32 %v1220_v44, %v446_v9  ;;  %v511_v12 = vadd.f32 %v1220_v44, %v510_v10 }
 0x196   : > { %561 = vst [vmem:[%s1226_s6 + $0x38] sm:$0xff] %v455_v7  ;;  %577 = vst [vmem:[%s1226_s6 + $0xb8] sm:$0xff] %v519_v8 }
 0x197   : > { %559 = vst [vmem:[%s1226_s6 + $0x28] sm:$0xff] %v447_v11  ;;  %575 = vst [vmem:[%s1226_s6 + $0xa8] sm:$0xff] %v511_v12 }
 0x1a1   : > { %v763_v13 = vpop.f32.mrb[8].mxu0  ;;  %v779_v14 = vpop.f32.mrb[8].mxu1 }
 0x1a2   : > { %v468_v15 = vadd.f32 %v763_v13, %v1220_v44  ;;  %v532_v16 = vadd.f32 %v779_v14, %v1220_v44  ;;  %v459_v17 = vpop.f32.mrb[9].mxu0  ;;  %v523_v18 = vpop.f32.mrb[9].mxu1 }
 0x1a3   : > { %v460_v19 = vadd.f32 %v1220_v44, %v459_v17  ;;  %v524_v20 = vadd.f32 %v1220_v44, %v523_v18  ;;  %v764_v21 = vpop.f32.mrb[10].mxu0  ;;  %v780_v22 = vpop.f32.mrb[10].mxu1 }
 0x1a4   : > { %564 = vst [vmem:[%s1226_s6 + $0x50] sm:$0xff] %v468_v15  ;;  %580 = vst [vmem:[%s1226_s6 + $0xd0] sm:$0xff] %v532_v16  ;;  %v471_v23 = vadd.f32 %v764_v21, %v1220_v44  ;;  %v535_v24 = vadd.f32 %v780_v22, %v1220_v44  ;;  %v462_v25 = vpop.f32.mrb[11].mxu0  ;;  %v526_v26 = vpop.f32.mrb[11].mxu1 }
 0x1a5   : > { %562 = vst [vmem:[%s1226_s6 + $0x40] sm:$0xff] %v460_v19  ;;  %578 = vst [vmem:[%s1226_s6 + $0xc0] sm:$0xff] %v524_v20  ;;  %v463_v27 = vadd.f32 %v1220_v44, %v462_v25  ;;  %v527_v28 = vadd.f32 %v1220_v44, %v526_v26 }
 0x1a6   : > { %565 = vst [vmem:[%s1226_s6 + $0x58] sm:$0xff] %v471_v23  ;;  %581 = vst [vmem:[%s1226_s6 + $0xd8] sm:$0xff] %v535_v24 }
 0x1a7   : > { %563 = vst [vmem:[%s1226_s6 + $0x48] sm:$0xff] %v463_v27  ;;  %579 = vst [vmem:[%s1226_s6 + $0xc8] sm:$0xff] %v527_v28 }
 0x1b1   : > { %v767_v29 = vpop.f32.mrb[12].mxu0  ;;  %v783_v30 = vpop.f32.mrb[12].mxu1 }
 0x1b2   : > { %v484_v31 = vadd.f32 %v767_v29, %v1220_v44  ;;  %v548_v32 = vadd.f32 %v783_v30, %v1220_v44  ;;  %v475_v33 = vpop.f32.mrb[13].mxu0  ;;  %v539_v34 = vpop.f32.mrb[13].mxu1 }
 0x1b3   : > { %v476_v35 = vadd.f32 %v1220_v44, %v475_v33  ;;  %v540_v36 = vadd.f32 %v1220_v44, %v539_v34  ;;  %v768_v37 = vpop.f32.mrb[14].mxu0  ;;  %v784_v38 = vpop.f32.mrb[14].mxu1 }
 0x1b4   : > { %568 = vst [vmem:[%s1226_s6 + $0x70] sm:$0xff] %v484_v31  ;;  %584 = vst [vmem:[%s1226_s6 + $0xf0] sm:$0xff] %v548_v32  ;;  %v487_v39 = vadd.f32 %v768_v37, %v1220_v44  ;;  %v551_v40 = vadd.f32 %v784_v38, %v1220_v44  ;;  %v478_v41 = vpop.f32.mrb[15].mxu0  ;;  %v542_v42 = vpop.f32.mrb[15].mxu1 }
 0x1b5   : > { %566 = vst [vmem:[%s1226_s6 + $0x60] sm:$0xff] %v476_v35  ;;  %582 = vst [vmem:[%s1226_s6 + $0xe0] sm:$0xff] %v540_v36  ;;  %v479_v43 = vadd.f32 %v1220_v44, %v478_v41  ;;  %v543_v45 = vadd.f32 %v1220_v44, %v542_v42 }
 0x1b6   : > { %569 = vst [vmem:[%s1226_s6 + $0x78] sm:$0xff] %v487_v39  ;;  %585 = vst [vmem:[%s1226_s6 + $0xf8] sm:$0xff] %v551_v40 }
 0x1b7   : > { %567 = vst [vmem:[%s1226_s6 + $0x68] sm:$0xff] %v479_v43  ;;  %583 = vst [vmem:[%s1226_s6 + $0xe8] sm:$0xff] %v543_v45 }
 0x1b8   : > { %976 = shalt.err (!%p973_p5)
}
 0x1b9   : > { %s977_s26 = scalar_lea.hbm %s1285_s10, 4096  ;;  %s981_s29 = scalar_lea.hbm %s1348_s3, 8192 }
 0x1ba   : > { %p978_p6 = scmp.ne.s32.totalorder %s1285_s10, %s977_s26  ;;  %p982_p10 = scmp.lt.u32.totalorder %s1285_s10, %s1348_s3 }
 0x1bb   : > { %p983_p11 = scmp.lt.u32.totalorder %s981_s29, %s977_s26  ;;  %p985_p13 = scmp.lt.u32.totalorder %s977_s26, %s1285_s10 }
 0x1bc   : > { %p979_p7 = pnand %p978_p6, %p1106_p4 }
 0x1bd   : > { %p984_p12 = por %p983_p11, %p982_p10 }
 0x1be   : > { %p980_p9 = pneg %p979_p7 }
 0x1bf   : > { %p986_p0 = por %p985_p13, %p984_p12 }
 0x1c1   : > { %p987_p1 = pnand %p986_p0, %p980_p9 }
 0x1c3   : > { %990 = shalt.err (!%p987_p1)
}
 0x1c4   : > { %s1044_s5 = smov 128   ;;  %s1045_s6 = smov 8  }
 0x1c5   : > { %817 = dma.vmem_to_hbm [thread:$0]  (%p1106_p4), %s1287_s8, 4096, %s1285_s10, %s1299_s11, %s1044_s5, %s1044_s5, %s1045_s6  }
 0x1c6 PF: > { %p823_p2 = scmp.ge.s32.totalorder %s1041_s17, 2  ;;  %s617_s7 = sand.u32 1, %s1021_s12  }
 0x1c7   : > { %s618_s15 = scalar_lea.sflag [#allocation3], %s617_s7 }
 0x1c8   : > { %p820_p3 = pnand %p823_p2, %p1113_p8 }
 0x1ca   : > { %1016 = dma.done.wait (!%p820_p3), %s618_s15, 4096  }
 0x1cb   : > { %1018 = vsyncadd (!%p820_p3), %s618_s15, 4294963200  ;;  %s16_s17 = sadd.s32 1, %s1041_s17   ;;  %s1351_s12 = smov %s1025_s13 }
 0x1cc   : > { %p13_p5 = scmp.ge.s32.totalorder %s16_s17, 4   ;;  %s1352_s13 = smov %s1029_s14 }
 0x1cd   : > { %s1353_s14 = smov %s1119_s25  ;;  %s1354_s15 = smov %s1037_s16 }
 0x1ce   : > { %s1355_s16 = smov %s1357_s20  ;;  %15 = sbr.rel (!%p13_p5) target bundleno = 4 (0x4), region = 67 }
 0x1d5   :  { %623 = vsyncpa [#allocation3], 1 }
 0x1d6   :  { %625 = vsyncpa [#allocation3 + $0x1], 1 }

</bundles_post_ra>
